<compile_context>
chip_gen: v7x
topology: tpu7x:2x2x1
jax: 0.10.0
libtpu: 0.0.40
codegen_flags: <defaults>
</compile_context>

<pallas_src>
import jax
import jax.numpy as jnp
from jax.experimental import pallas as pl
from jax.experimental.pallas import tpu as pltpu


def _round_up(x, m):
    return (x + m - 1) // m * m


def _linear_clamp_kernel(x_ref, w_ref, b_ref, o_ref):
    # v1 = x @ W + b  (MXU matmul, f32 accumulate)
    v1 = jnp.dot(x_ref[...], w_ref[...], preferred_element_type=jnp.float32)
    v1 = v1 + b_ref[...]                       # (tm, N) + (1, N) broadcast
    # torch.clamp(v1, 0.0) then torch.clamp(., 6.0) with positional (min=) args
    #   == max(max(v1, 0), 6) == max(v1, 6)
    v2 = v1 * jnp.maximum(v1, 6.0)
    # multiply by precomputed reciprocal instead of an f32 divide
    o_ref[...] = (v2 * (1.0 / 6.0)).astype(o_ref.dtype)


def linear_clamp(x, w, b, *, tile_m=2048):
    """x: [B, S, K], w: [K, N], b: [N]  ->  [B, S, N]."""
    B, S, K = x.shape
    N = w.shape[1]
    M = B * S

    # Row-tile size: multiple of 8 (sublane) unless M itself is tiny (then the
    # full-dim block is always legal). Cap at ~half of M so mid-size problems
    # still produce >= 2 grid steps for v7x megacore sharding; the ragged last
    # block (when tm does not divide M) is handled by Pallas edge masking.
    if M < 8:
        tm = M
    else:
        tm = min(tile_m, _round_up(pl.cdiv(M, 2), 8))
    grid = (pl.cdiv(M, tm),)

    x2d = x.reshape(M, K)        # metadata-only
    b2d = b.reshape(1, N)

    cost = pl.CostEstimate(
        flops=2 * M * K * N,
        transcendentals=0,
        bytes_accessed=4 * (M * K + K * N + N + M * N),
    )

    out = pl.pallas_call(
        _linear_clamp_kernel,
        out_shape=jax.ShapeDtypeStruct((M, N), x.dtype),
        grid_spec=pltpu.PrefetchScalarGridSpec(
            num_scalar_prefetch=0,
            grid=grid,
            in_specs=[
                pl.BlockSpec((tm, K), lambda i: (i, 0)),   # x rows, pipelined
                pl.BlockSpec((K, N), lambda i: (0, 0)),    # weight, resident
                pl.BlockSpec((1, N), lambda i: (0, 0)),    # bias, resident
            ],
            out_specs=pl.BlockSpec((tm, N), lambda i: (i, 0)),
        ),
        compiler_params=pltpu.CompilerParams(
            dimension_semantics=("parallel",),  # rows independent; megacore on v7x
        ),
        cost_estimate=cost,
    )(x2d, w, b2d)

    return out.reshape(B, S, N)  # metadata-only


def _reference(x, w, b):
    v1 = x @ w + b
    v2 = v1 * jnp.maximum(jnp.maximum(v1, 0.0), 6.0)
    return v2 / 6.0


if __name__ == "__main__":
    key = jax.random.PRNGKey(0)
    k_x, k_w, k_b, k_x2 = jax.random.split(key, 4)

    # Linear(15, 17) -> last dim of x must be 15 (the spec's (3,5,7) input is
    # inconsistent with the layer and would fail in torch as well).
    B, S, K, N = 3, 5, 15, 17

    x1 = jax.random.normal(k_x, (B, S, K), dtype=jnp.float32)

    # Deterministic Linear(15, 17)-style init (uniform(-1/sqrt(K), 1/sqrt(K))),
    # weight stored pre-transposed as [K, N].
    bound = 1.0 / (K ** 0.5)
    w = jax.random.uniform(k_w, (K, N), jnp.float32, minval=-bound, maxval=bound)
    b = jax.random.uniform(k_b, (N,), jnp.float32, minval=-bound, maxval=bound)

    out = linear_clamp(x1, w, b)
    jax.block_until_ready(out)
    ref = _reference(x1, w, b)
    assert out.shape == (B, S, N)
    assert jnp.allclose(out, ref, atol=1e-5, rtol=1e-5)

    # Second check: larger M, even 2-step grid, no padding anywhere.
    B2, S2 = 4, 300
    x2 = jax.random.normal(k_x2, (B2, S2, K), dtype=jnp.float32)
    out2 = linear_clamp(x2, w, b)
    jax.block_until_ready(out2)
    ref2 = _reference(x2, w, b)
    assert out2.shape == (B2, S2, N)
    assert jnp.allclose(out2, ref2, atol=1e-5, rtol=1e-5)

    print("KERNEL_OK")
</pallas_src>

<mosaic_0001>
module attributes {stable_mosaic.version = 11 : i64} {
  func.func @_linear_clamp_kernel(%arg0: i32, %arg1: memref<8x15xf32, #tpu.memory_space<vmem>>, %arg2: memref<15x17xf32, #tpu.memory_space<vmem>>, %arg3: memref<1x17xf32, #tpu.memory_space<vmem>>, %arg4: memref<8x17xf32, #tpu.memory_space<vmem>>) attributes {dimension_semantics = [#tpu.dimension_semantics<parallel>], iteration_bounds = array<i64: 2>, scalar_prefetch = 0 : i64, scratch_operands = 0 : i64, tpu.core_type = #tpu.core_type<tc>, window_params = [{transform_indices = @transform_0, window_bounds = array<i64: 8, 15>}, {pipeline_mode = #tpu.pipeline_mode<synchronous>, transform_indices = @transform_1, window_bounds = array<i64: 15, 17>}, {pipeline_mode = #tpu.pipeline_mode<synchronous>, transform_indices = @transform_2, window_bounds = array<i64: 1, 17>}, {transform_indices = @transform_3, window_bounds = array<i64: 8, 17>}]} {
    %c0 = arith.constant 0 : index
    %c0_0 = arith.constant 0 : index
    %0 = vector.load %arg1[%c0, %c0_0] : memref<8x15xf32, #tpu.memory_space<vmem>>, vector<8x15xf32>
    %c0_1 = arith.constant 0 : index
    %c0_2 = arith.constant 0 : index
    %1 = vector.load %arg2[%c0_1, %c0_2] : memref<15x17xf32, #tpu.memory_space<vmem>>, vector<15x17xf32>
    %cst = arith.constant dense<0.000000e+00> : vector<8x17xf32>
    %2 = tpu.matmul %0, %1, %cst {dimension_numbers = #tpu.dot_dimension_numbers<[1], [0], [0], [1], [0, 0, 1, 1], [], []>} : vector<8x15xf32>, vector<15x17xf32>, vector<8x17xf32> -> vector<8x17xf32>
    %c0_3 = arith.constant 0 : index
    %c0_4 = arith.constant 0 : index
    %3 = vector.load %arg3[%c0_3, %c0_4] : memref<1x17xf32, #tpu.memory_space<vmem>>, vector<1x17xf32>
    %4 = vector.broadcast %3 : vector<1x17xf32> to vector<8x17xf32>
    %5 = arith.addf %2, %4 : vector<8x17xf32>
    %cst_5 = arith.constant 6.000000e+00 : f32
    %6 = vector.broadcast %cst_5 : f32 to vector<8x17xf32>
    %7 = arith.maximumf %5, %6 : vector<8x17xf32>
    %8 = arith.mulf %5, %7 : vector<8x17xf32>
    %cst_6 = arith.constant 0.166666672 : f32
    %9 = vector.broadcast %cst_6 : f32 to vector<8x17xf32>
    %10 = arith.mulf %8, %9 : vector<8x17xf32>
    %c0_7 = arith.constant 0 : index
    %c0_8 = arith.constant 0 : index
    %11 = vector.load %arg4[%c0_7, %c0_8] : memref<8x17xf32, #tpu.memory_space<vmem>>, vector<8x17xf32>
    tpu.vector_store %arg4[%c0_7, %c0_8], %10 {strides = array<i32>} : memref<8x17xf32, #tpu.memory_space<vmem>>, vector<8x17xf32>,
    return
  }
  func.func @transform_0(%arg0: i32) -> (i32, i32) {
    %c0_i32 = arith.constant 0 : i32
    %c0_i32_0 = arith.constant 0 : i32
    return %arg0, %c0_i32 : i32, i32
  }
  func.func @transform_1(%arg0: i32) -> (i32, i32) {
    %c0_i32 = arith.constant 0 : i32
    %c0_i32_0 = arith.constant 0 : i32
    %c0_i32_1 = arith.constant 0 : i32
    return %c0_i32, %c0_i32_0 : i32, i32
  }
  func.func @transform_2(%arg0: i32) -> (i32, i32) {
    %c0_i32 = arith.constant 0 : i32
    %c0_i32_0 = arith.constant 0 : i32
    %c0_i32_1 = arith.constant 0 : i32
    return %c0_i32, %c0_i32_0 : i32, i32
  }
  func.func @transform_3(%arg0: i32) -> (i32, i32) {
    %c0_i32 = arith.constant 0 : i32
    %c0_i32_0 = arith.constant 0 : i32
    return %arg0, %c0_i32 : i32, i32
  }
}

</mosaic_0001>

<bundles_post_ra>
// kernel: tpu_custom_call.1
= control target key start
LH: loop header
LB: loop body
LE: loop exit
PB: predicated region body
PF: predicated region fallthrough
CT: control target
= control target key end

     0   :  { %8 = vsyncpa [#allocation3], 0  ;;  %s840_s0 = inlined_call_operand.hbm [shape: f32[15,15], index: 0, kind: input, shape index: {}]   ;;  %s841_s1 = inlined_call_operand.hbm [shape: f32[15,17], index: 1, kind: input, shape index: {}]   ;;  %s842_s2 = inlined_call_operand.vmem [shape: f32[1,17], index: 2, kind: input, shape index: {}]   ;;  %s843_s3 = inlined_call_operand.hbm [shape: f32[15,17], index: 3, kind: output, shape index: {}]  }
   0x1   :  { %10 = vsyncpa [#allocation3 + $0x1], 0 }
   0x2   :  { %11 = vsyncpa [#allocation6], 0 }
   0x3   :  { %12 = vsyncpa [#allocation4], 0 }
   0x4   :  { %14 = vsyncpa [#allocation4 + $0x1], 0  ;;  %s641_s12 = smov 0   ;;  %s643_s13 = smov 0  }
   0x5   :  { %s645_s14 = smov 0   ;;  %s647_s15 = smov 0  }
   0x6 LB: > { %s662_s16 = sadd.s32 4294967295, %s610_s15   ;;  %s388_s17 = sadd.s32 4294967294, %s610_s15   ;;  %s610_s15 = sphi %s647_s15, %s863_s15   ;;  %s606_s14 = sphi %s645_s14, %s862_s14   ;;  %s602_s13 = sphi %s643_s13, %s861_s13   ;;  %s598_s12 = sphi %s641_s12, %s860_s12  }
   0x7   : > { %p40_p0 = scmp.ne.s32.totalorder %s602_s13, %s598_s12  ;;  %p844_p1 = scmp.eq.s32.totalorder %s662_s16, 0 }
   0x8   : > { %p112_p3 = scmp.eq.s32.totalorder %s388_s17, 1  ;;  %p389_p5 = scmp.ge.s32.totalorder %s610_s15, 1 }
   0x9   : > { %p671_p4 = por %p844_p1, %p40_p0  ;;  %p119_p7 = scmp.lt.s32.totalorder %s610_s15, 3 }
   0xa   : > { %p676_p6 = por %p112_p3, %p40_p0  ;;  %s612_s21 = smov [#allocation5]  }
   0xb   : > { %s847_s18 = scalar_select %p671_p4, 1, 0 }
   0xc   : > { %s848_s19 = scalar_select %p676_p6, 1, 0 }
   0xd   : > { %p681_p8 = pnand %p389_p5, %p119_p7  ;;  %s131_s22 = sshll.u32 %s612_s21, 4  ;;  %s685_s22 = int_to_ptr.vmem [resolvable:$true] %s131_s22 }
   0xe   : > { %s697_s24 = sadd.s32 1, %s610_s15   ;;  %s27_s25 = sadd.s32 1, %s606_s14 }
   0xf   : > { %s849_s20 = scalar_select %p681_p8, 1, 0 }
  0x10   : > { %p427_p9 = pneg %p681_p8  ;;  %s24_s26 = ssub.s32 %s610_s15, %s697_s24 }
  0x11   : > { %s482_s29 = scalar_lea.hbm %s841_s1, 256 }
  0x12   : > { %p692_p11 = pnand %p427_p9, %p844_p1  ;;  %p483_p12 = scmp.ne.s32.totalorder %s841_s1, %s482_s29 }
  0x13   : > { %p489_p5 = scmp.lt.u32.totalorder %s482_s29, %s841_s1 }
  0x14   : > { %p484_p13 = pneg %p692_p11 }
  0x16   : > { %p485_p0 = pnand %p484_p13, %p483_p12 }
  0x18   : > { %p486_p3 = pneg %p485_p0 }
  0x1a   : > { %p491_p7 = pnand %p489_p5, %p486_p3 }
  0x1c   : > { %494 = shalt.err (!%p491_p7)
}
  0x1d   : > { %s495_s7 = scalar_lea.vmem %s685_s22, 256  ;;  %p503_p2 = scmp.lt.s32.totalorder %s685_s22, %s685_s22 }
  0x1e   : > { %p496_p9 = scmp.ne.s32.totalorder %s685_s22, %s495_s7  ;;  %p504_p6 = scmp.lt.s32.totalorder %s495_s7, %s495_s7 }
  0x20   : > { %p498_p10 = pnand %p496_p9, %p484_p13  ;;  %p505_p4 = por %p504_p6, %p503_p2 }
  0x22   : > { %p499_p1 = pneg %p498_p10 }
  0x24   : > { %p506_p8 = pnand %p505_p4, %p499_p1 }
  0x26   : > { %509 = shalt.err (!%p506_p8)
}
  0x27   : > { %s613_s8 = smov 128   ;;  %s614_s9 = smov 8  }
  0x28   : > { %430 = dma.hbm_to_vmem [thread:$0]  (!%p692_p11), %s841_s1, 256, %s685_s22, [#allocation6], %s613_s8, %s613_s8, %s614_s9  }
  0x29   : > { %p25_p2 = scmp.eq.s32.totalorder %s24_s26, 0  ;;  %p34_p1 = scmp.ne.s32.totalorder %s606_s14, %s602_s13 }
  0x2a   : > { %p35_p4 = scmp.eq.s32.totalorder %s610_s15, 0  ;;  %p440_p6 = scmp.lt.s32.totalorder %s610_s15, 2 }
  0x2b   : > { %s728_s17 = scalar_select %p25_p2, %s606_s14, %s27_s25  }
  0x2c   : > { %p36_p8 = por %p35_p4, %p34_p1  ;;  %p851_p10 = scmp.eq.s32.totalorder %s662_s16, 1 }
  0x2d   : > { %s148_s27 = sand.u32 1, %s606_s14   ;;  %s393_s28 = sshll.u32 %s610_s15, 7 }
  0x2e   : > { %p732_p12 = por %p851_p10, %p34_p1  ;;  %s392_s29 = sshll.u32 %s148_s27, 3 }
  0x2f   : > { %s741_s4 = scalar_lea.hbm %s840_s0, %s393_s28  ;;  %s152_s22 = scalar_lea.vmem [#allocation2], %s392_s29 }
  0x30   : > { %s159_s25 = sshll.u32 %s152_s22, 4  ;;  %p743_p11 = pnand %p440_p6, %p36_p8  ;;  %s747_s25 = int_to_ptr.vmem [resolvable:$true] %s159_s25 }
  0x31   : > { %s149_s5 = scalar_lea.sflag [#allocation3], %s148_s27  ;;  %s510_s6 = scalar_lea.hbm %s741_s4, 128 }
  0x32   : > { %p511_p13 = scmp.ne.s32.totalorder %s741_s4, %s510_s6  ;;  %p512_p0 = pneg %p743_p11 }
  0x33   : > { %s515_s9 = scalar_lea.hbm %s840_s0, 256  ;;  %p516_p7 = scmp.lt.u32.totalorder %s741_s4, %s840_s0 }
  0x34   : > { %p513_p3 = pnand %p512_p0, %p511_p13  ;;  %p517_p9 = scmp.lt.u32.totalorder %s515_s9, %s510_s6 }
  0x35   : > { %p519_p1 = scmp.lt.u32.totalorder %s510_s6, %s741_s4 }
  0x36   : > { %p514_p5 = pneg %p513_p3  ;;  %p518_p2 = por %p517_p9, %p516_p7 }
  0x38   : > { %p520_p4 = por %p519_p1, %p518_p2 }
  0x3a   : > { %p521_p6 = pnand %p520_p4, %p514_p5 }
  0x3c   : > { %524 = shalt.err (!%p521_p6)
}
  0x3d   : > { %s525_s27 = scalar_lea.vmem %s747_s25, 128  ;;  %s615_s28 = smov [#allocation2]  }
  0x3e   : > { %p526_p8 = scmp.ne.s32.totalorder %s747_s25, %s525_s27  ;;  %s530_s29 = sshll.u32 %s615_s28, 4  ;;  %s531_s29 = int_to_ptr.vmem [resolvable:$false] %s530_s29 }
  0x3f   : > { %s532_s23 = scalar_lea.vmem %s531_s29, 256  ;;  %p533_p3 = scmp.lt.s32.totalorder %s747_s25, %s531_s29 }
  0x40   : > { %p528_p10 = pnand %p526_p8, %p512_p0  ;;  %p534_p7 = scmp.lt.s32.totalorder %s532_s23, %s525_s27 }
  0x42   : > { %p529_p13 = pneg %p528_p10  ;;  %p535_p9 = por %p534_p7, %p533_p3 }
  0x44   : > { %p536_p2 = pnand %p535_p9, %p529_p13 }
  0x46   : > { %539 = shalt.err (!%p536_p2)
}
  0x47   : > { %434 = dma.hbm_to_vmem [thread:$0]  (!%p743_p11), %s741_s4, 128, %s747_s25, %s149_s5  }
  0x48   : > { %p854_p5 = scmp.ne.s32.totalorder %s849_s20, 0 }
  0x49   : > { %s777_s30 = sand.u32 (!%p854_p5), 1, %s602_s13   ;;  %p855_p0 = scmp.ne.s32.totalorder (!%p854_p5), %s847_s18, 0 }
  0x4a   : > { %168 = sbr.rel (%p854_p5) target bundleno = 326 (0x146), region = 32  ;;  %s395_s22 = sshll.u32 (!%p854_p5), %s777_s30, 3 }
  0x4b   : > { %s171_s6 = scalar_lea.sflag (!%p854_p5), [#allocation3], %s777_s30  ;;  %s174_s7 = scalar_lea.vmem (!%p854_p5), [#allocation2], %s395_s22 }
  0x51   : > { %585 = dma.done.wait (%p855_p0), %s171_s6, 128  }
  0x52   : > { %587 = vsyncadd (%p855_p0), %s171_s6, 4294967168  ;;  %p856_p1 = scmp.eq.s32.totalorder %s662_s16, 0 }
  0x54   : > { %589 = dma.done.wait (%p856_p1), [#allocation6], 256   ;;  %p857_p11 = pmov %p856_p1 }
  0x55   : > { %v616_v0 = vmov 0.0|0.0   ;;  %vm617_vm0 = vmmov 0   ;;  %v618_v1 = vmov 0.0   ;;  %vm215_vm1 = vcmask 1046528   ;;  %v202_v2 = vld [vmem:[#allocation5] sm:$0xff]  ;;  %v201_v5 = vld [vmem:[%s174_s7] sm:$0xff] }
  0x56   : > { %591 = vsyncadd (%p857_p11), [#allocation6], 4294967040  ;;  %415 = vmatprep.subr.bf16.mxu0 %v616_v0  ;;  %412 = vmatprep.mubr.msk.f32.mxu0 %vm617_vm0, %v618_v1  ;;  %v203_v3 = vld [vmem:[#allocation5 + $0x8] sm:$0x7f]  ;;  %vm619_vm2 = vmmov 1   ;;  %vm211_vm4 = vcmask 121856  }
  0x57   : > { %vm417_vm3 = vmpackc.low %vm215_vm1, %vm619_vm2  ;;  %v416_v4 = vpack.c.bf16 %v203_v3, %v202_v2  ;;  %v398_v6 = vld [vmem:[%s842_s2] ss:$0 sm:$0xff]  ;;  %s402_s4 = sshll.u32 %s662_s16, 7  ;;  %s200_s25 = scalar_lea.vmem [#allocation7], %s395_s22  ;;  %vm292_vm5 = vcmask 138240  }
  0x58   : > { %s308_s26 = sshll.u32 %s200_s25, 4  ;;  %s796_s9 = scalar_lea.hbm %s843_s3, %s402_s4  ;;  %s798_s26 = int_to_ptr.vmem [resolvable:$true] %s308_s26 }
  0x59   : > { %418 = vmatpush3.bf16.msk.msra.mxu0 %vm417_vm3, %v416_v4  ;;  %s295_s10 = scalar_lea.sflag [#allocation4], %s777_s30  ;;  %s540_s11 = scalar_lea.vmem %s798_s26, 128 }
  0x5a   : > { %p541_p4 = scmp.ne.s32.totalorder %s798_s26, %s540_s11  ;;  %s620_s16 = smov [#allocation7]  }
  0x5b   : > { %s544_s27 = sshll.u32 %s620_s16, 4  ;;  %s545_s27 = int_to_ptr.vmem [resolvable:$false] %s544_s27 }
  0x5c   : > { %413 = vmatmul.mubr.msk.f32.vlgmr.msra.gmra.mrb[0].mxu0 %vm211_vm4, %v201_v5  ;;  %p542_p6 = pnand %p541_p4, %p732_p12  ;;  %s546_s28 = scalar_lea.vmem %s545_s27, 256 }
  0x5d   : > { %p547_p10 = scmp.lt.s32.totalorder %s798_s26, %s545_s27  ;;  %p548_p13 = scmp.lt.s32.totalorder %s546_s28, %s540_s11 }
  0x5e   : > { %p543_p8 = pneg %p542_p6 }
  0x5f   : > { %p549_p3 = por %p548_p13, %p547_p10 }
  0x61   : > { %p550_p7 = pnand %p549_p3, %p543_p8 }
 0x12f   : > { %v285_v7 = vpop.f32.mrb[0].mxu0 }
 0x130   : > { %v286_v8 = vadd.f32 %v398_v6, %v285_v7  ;;  %v414_v9 = vpop.f32.mrb[1].mxu0 }
 0x132   : > { %v289_v10 = vmax.f32 %v286_v8, 6.0 }
 0x134   : > { %v290_v11 = vmul.f32 %v289_v10, %v286_v8 }
 0x136   : > { %v291_v12 = vmul.f32 0.16666667, %v290_v11 }
 0x138   : > { %293 = vst.msk [vmem:[%s200_s25] sm:$0xff] %vm292_vm5, %v291_v12 }
 0x139   : > { %553 = shalt.err (!%p550_p7)
}
 0x13a   : > { %s554_s29 = scalar_lea.hbm %s796_s9, 128  ;;  %s558_s22 = scalar_lea.hbm %s843_s3, 256 }
 0x13b   : > { %p555_p9 = scmp.ne.s32.totalorder %s796_s9, %s554_s29  ;;  %p559_p0 = scmp.lt.u32.totalorder %s796_s9, %s843_s3 }
 0x13c   : > { %p560_p1 = scmp.lt.u32.totalorder %s558_s22, %s554_s29  ;;  %p562_p4 = scmp.lt.u32.totalorder %s554_s29, %s796_s9 }
 0x13d   : > { %p556_p2 = pnand %p555_p9, %p732_p12 }
 0x13e   : > { %p561_p11 = por %p560_p1, %p559_p0 }
 0x13f   : > { %p557_p5 = pneg %p556_p2 }
 0x140   : > { %p563_p6 = por %p562_p4, %p561_p11 }
 0x142   : > { %p564_p8 = pnand %p563_p6, %p557_p5 }
 0x144   : > { %567 = shalt.err (!%p564_p8)
}
 0x145   : > { %425 = dma.vmem_to_hbm [thread:$0]  (%p732_p12), %s798_s26, 128, %s796_s9, %s295_s10  }
 0x146 PF: > { %s320_s18 = sand.u32 1, %s598_s12   ;;  %p858_p10 = scmp.ne.s32.totalorder %s848_s19, 0 }
 0x147   : > { %p859_p13 = scmp.ge.s32.totalorder %s610_s15, 2  ;;  %s321_s20 = scalar_lea.sflag [#allocation4], %s320_s18 }
 0x149   : > { %p436_p3 = pnand %p859_p13, %p858_p10 }
 0x14b   : > { %593 = dma.done.wait (!%p436_p3), %s321_s20, 128  }
 0x14c   : > { %595 = vsyncadd (!%p436_p3), %s321_s20, 4294967168  ;;  %p17_p7 = scmp.ge.s32.totalorder %s697_s24, 4   ;;  %s860_s12 = smov %s602_s13 }
 0x14d   : > { %s861_s13 = smov %s606_s14  ;;  %s862_s14 = smov %s728_s17 }
 0x14e   : > { %s863_s15 = smov %s697_s24  ;;  %19 = sbr.rel (!%p17_p7) target bundleno = 6 (0x6), region = 81 }
 0x155   :  { %326 = vsyncpa [#allocation3], 1 }
 0x156   :  { %328 = vsyncpa [#allocation3 + $0x1], 1 }
 0x157   :  { %329 = vsyncpa [#allocation6], 1 }
 0x158   :  { %330 = vsyncpa [#allocation4], 1 }
 0x159   :  { %332 = vsyncpa [#allocation4 + $0x1], 1 }

</bundles_post_ra>
